<compile_context>
chip_gen: v7x
topology: tpu7x:2x2x1
jax: 0.10.0
libtpu: 0.0.40
codegen_flags: <defaults>
</compile_context>

<pallas_src>
import functools

import jax
import jax.numpy as jnp
from jax.experimental import pallas as pl
from jax.experimental.pallas import tpu as pltpu


# ----------------------------------------------------------------------------
# Fused Pallas kernel
# ----------------------------------------------------------------------------
def _fused_loss_kernel(margin, c_weight, r_weight, inv_be,
                       x_ref, lab_col_ref, lab_row_ref, rec_ref, orig_ref,
                       out_ref):
    """Fused contrastive + reconstruction loss.

    Packed (1, 128) output: lane 0 = total, lane 1 = contrastive, lane 2 = MSE.
    """
    x = x_ref[...].astype(jnp.float32)
    b = x.shape[0]

    # Cross term on the MXU; squared row norms directly on the VPU.
    gram = jax.lax.dot_general(x, x, (((1,), (1,)), ((), ())),
                               preferred_element_type=jnp.float32)       # (B, B)
    sq_col = jnp.sum(x * x, axis=1, keepdims=True)                       # (B, 1) = ||x_i||^2

    row_idx = jax.lax.broadcasted_iota(jnp.int32, (b, b), 0)
    col_idx = jax.lax.broadcasted_iota(jnp.int32, (b, b), 1)
    eye = (row_idx == col_idx).astype(jnp.float32)
    # Lane-oriented copy of the squared norms from the gram diagonal
    # (single multiply + sublane reduce; avoids an unaligned transpose).
    sq_row = jnp.sum(gram * eye, axis=0, keepdims=True)                  # (1, B) = ||x_j||^2

    d2 = jnp.maximum(sq_col + sq_row - 2.0 * gram, 0.0)
    # Forward-only: sqrt(0) on the diagonal is fine; the diagonal is masked out below.
    dist = jnp.sqrt(d2)                                                  # torch.cdist(p=2)

    same = (lab_col_ref[...] == lab_row_ref[...]).astype(jnp.float32)    # exact int32 compare
    off_diag = 1.0 - eye
    mask_pos = same * off_diag
    mask_neg = (1.0 - same) * off_diag

    pos_sum = jnp.sum(dist * mask_pos, keepdims=True)                    # (1, 1)
    pos_cnt = jnp.sum(mask_pos, keepdims=True)
    neg_sum = jnp.sum(jnp.maximum(margin - dist, 0.0) * mask_neg, keepdims=True)
    neg_cnt = jnp.sum(mask_neg, keepdims=True)

    pos_mean = pos_sum / jnp.maximum(pos_cnt, 1.0)
    neg_mean = neg_sum / jnp.maximum(neg_cnt, 1.0)
    # Mirrors the torch guard: contrastive loss is 0 when either pair set is empty
    # (the PyTorch code returns a fresh 0-tensor in that case).
    have_both = jnp.logical_and(pos_cnt > 0.0, neg_cnt > 0.0)
    c_loss = jnp.where(have_both, pos_mean + neg_mean, 0.0)              # (1, 1)

    diff = rec_ref[...].astype(jnp.float32) - orig_ref[...].astype(jnp.float32)
    r_loss = jnp.sum(diff * diff, keepdims=True) * inv_be                # (1, 1) MSE

    total = c_weight * c_loss + r_weight * r_loss                        # (1, 1)

    # Single lane-dense packed store (one vst instead of four masked scalar stores).
    lane = jax.lax.broadcasted_iota(jnp.int32, (1, 128), 1)
    packed = (total * (lane == 0).astype(jnp.float32)
              + c_loss * (lane == 1).astype(jnp.float32)
              + r_loss * (lane == 2).astype(jnp.float32))
    out_ref[...] = packed


# ----------------------------------------------------------------------------
# Wrappers
# ----------------------------------------------------------------------------
def _fused_losses(latent, labels, reconstructed, original,
                  contrastive_weight, reconstruction_weight, margin):
    b, d = latent.shape
    b2, e = reconstructed.shape
    assert b2 == b, "latent and reconstruction batch sizes must match"

    # Both views are free host-side reshapes of the same label vector.
    lab_col = labels.reshape(b, 1).astype(jnp.int32)
    lab_row = labels.reshape(1, b).astype(jnp.int32)

    kernel = functools.partial(_fused_loss_kernel, float(margin),
                               float(contrastive_weight),
                               float(reconstruction_weight),
                               1.0 / float(b * e))

    flops = 2 * b * b * d + 12 * b * b + 3 * b * e
    bytes_accessed = 4 * (b * d + 2 * b * e + 2 * b + 128)

    packed = pl.pallas_call(
        kernel,
        out_shape=jax.ShapeDtypeStruct((1, 128), jnp.float32),
        grid=(1,),
        in_specs=[
            pl.BlockSpec((b, d), lambda i: (0, 0)),
            pl.BlockSpec((b, 1), lambda i: (0, 0)),
            pl.BlockSpec((1, b), lambda i: (0, 0)),
            pl.BlockSpec((b, e), lambda i: (0, 0)),
            pl.BlockSpec((b, e), lambda i: (0, 0)),
        ],
        out_specs=pl.BlockSpec((1, 128), lambda i: (0, 0)),
        compiler_params=pltpu.CompilerParams(
            dimension_semantics=("arbitrary",)),
        cost_estimate=pl.CostEstimate(flops=flops, transcendentals=0,
                                      bytes_accessed=bytes_accessed),
    )(latent, lab_col, lab_row, reconstructed, original)

    return packed[0, 0], packed[0, 1], packed[0, 2]   # total, contrastive, reconstruction


def topologically_regularized_combined_loss(
        latent_features, reconstructed, original_embeddings, labels,
        contrastive_weight=1.0, reconstruction_weight=0.1, margin=2.0,
        topological_weight=1.0, topological_warmup_epochs=10,
        max_topological_weight=5.0, current_epoch=0):
    """Mirrors TopologicallyRegularizedCombinedLoss.forward (no prototypes)."""
    total, c_loss, r_loss = _fused_losses(
        latent_features, labels, reconstructed, original_embeddings,
        contrastive_weight, reconstruction_weight, margin)

    # Topological warmup schedule (weight is 0 during warmup / epoch 0).
    if current_epoch < topological_warmup_epochs:
        topo_w = 0.0
    else:
        topo_w = min(topological_weight * current_epoch / topological_warmup_epochs,
                     max_topological_weight)
    # TODO(synk): TorchTopologicalPersistenceLoss (persistent-homology over external
    # prototypes) has no Pallas equivalent and no prototypes are provided; its
    # contribution is identically 0 here.
    topo_loss = jnp.float32(0.0) * topo_w

    total = total + topo_loss
    components = {
        'contrastive_loss': c_loss,
        'reconstruction_loss': r_loss,
        'topological_loss': topo_loss,
        'topological_weight': topo_w,
    }
    return total, components


# ----------------------------------------------------------------------------
# Pure-JAX reference (numeric sanity check)
# ----------------------------------------------------------------------------
def _reference(latent, reconstructed, original, labels,
               contrastive_weight=1.0, reconstruction_weight=0.1, margin=2.0):
    diff = latent[:, None, :] - latent[None, :, :]
    dist = jnp.sqrt(jnp.maximum(jnp.sum(diff * diff, axis=-1), 0.0))
    same = (labels[:, None] == labels[None, :]).astype(jnp.float32)
    eye = jnp.eye(latent.shape[0], dtype=jnp.float32)
    mask_pos = same * (1.0 - eye)
    mask_neg = (1.0 - same) * (1.0 - eye)
    pos_mean = jnp.sum(dist * mask_pos) / jnp.sum(mask_pos)
    neg_mean = jnp.sum(jnp.maximum(margin - dist, 0.0) * mask_neg) / jnp.sum(mask_neg)
    c_loss = pos_mean + neg_mean
    r_loss = jnp.mean((reconstructed - original) ** 2)
    total = contrastive_weight * c_loss + reconstruction_weight * r_loss
    return total, c_loss, r_loss


# ----------------------------------------------------------------------------
if __name__ == "__main__":
    key = jax.random.PRNGKey(0)
    k1, k2, k3, k4 = jax.random.split(key, 4)

    B, D, E = 16, 32, 128            # batch, latent dim, embedding dim
    latent = jax.random.normal(k1, (B, D), dtype=jnp.float32)
    labels = jax.random.randint(k2, (B,), 0, 2, dtype=jnp.int32)
    original = jax.random.normal(k3, (B, E), dtype=jnp.float32)
    reconstructed = original + 0.1 * jax.random.normal(k4, (B, E), dtype=jnp.float32)

    total, comps = topologically_regularized_combined_loss(
        latent, reconstructed, original, labels)
    total = jax.block_until_ready(total)

    ref_total, ref_c, ref_r = _reference(latent, reconstructed, original, labels)
    assert jnp.allclose(total, ref_total, rtol=1e-4, atol=1e-4), (total, ref_total)
    assert jnp.allclose(comps['contrastive_loss'], ref_c, rtol=1e-4, atol=1e-4)
    assert jnp.allclose(comps['reconstruction_loss'], ref_r, rtol=1e-4, atol=1e-4)

    print("KERNEL_OK")
</pallas_src>

<mosaic_0001>
module attributes {stable_mosaic.version = 11 : i64} {
  func.func @_fused_loss_kernel(%arg0: i32, %arg1: memref<16x32xf32, #tpu.memory_space<vmem>>, %arg2: memref<16x1xi32, #tpu.memory_space<vmem>>, %arg3: memref<1x16xi32, #tpu.memory_space<vmem>>, %arg4: memref<16x128xf32, #tpu.memory_space<vmem>>, %arg5: memref<16x128xf32, #tpu.memory_space<vmem>>, %arg6: memref<1x128xf32, #tpu.memory_space<vmem>>) attributes {dimension_semantics = [#tpu.dimension_semantics<arbitrary>], iteration_bounds = array<i64: 1>, scalar_prefetch = 0 : i64, scratch_operands = 0 : i64, tpu.core_type = #tpu.core_type<tc>, window_params = [{pipeline_mode = #tpu.pipeline_mode<synchronous>, transform_indices = @transform_0, window_bounds = array<i64: 16, 32>}, {pipeline_mode = #tpu.pipeline_mode<synchronous>, transform_indices = @transform_1, window_bounds = array<i64: 16, 1>}, {pipeline_mode = #tpu.pipeline_mode<synchronous>, transform_indices = @transform_2, window_bounds = array<i64: 1, 16>}, {pipeline_mode = #tpu.pipeline_mode<synchronous>, transform_indices = @transform_3, window_bounds = array<i64: 16, 128>}, {pipeline_mode = #tpu.pipeline_mode<synchronous>, transform_indices = @transform_4, window_bounds = array<i64: 16, 128>}, {pipeline_mode = #tpu.pipeline_mode<synchronous>, transform_indices = @transform_5, window_bounds = array<i64: 1, 128>}]} {
    %c0 = arith.constant 0 : index
    %c0_0 = arith.constant 0 : index
    %0 = vector.load %arg1[%c0, %c0_0] : memref<16x32xf32, #tpu.memory_space<vmem>>, vector<16x32xf32>
    %cst = arith.constant dense<0.000000e+00> : vector<16x16xf32>
    %1 = tpu.matmul %0, %0, %cst {dimension_numbers = #tpu.dot_dimension_numbers<[1], [1], [0], [0], [0, 0, 1, 0], [], []>} : vector<16x32xf32>, vector<16x32xf32>, vector<16x16xf32> -> vector<16x16xf32>
    %2 = arith.mulf %0, %0 : vector<16x32xf32>
    %cst_1 = arith.constant dense<0.000000e+00> : vector<16xf32>
    %3 = vector.multi_reduction <add>, %2, %cst_1 [1] : vector<16x32xf32> to vector<16xf32>
    %4 = vector.shape_cast %3 : vector<16xf32> to vector<16x1xf32>
    %5 = tpu.iota {dimensions = array<i32: 0>} : vector<16x16xi32>
    %6 = tpu.iota {dimensions = array<i32: 1>} : vector<16x16xi32>
    %7 = arith.cmpi eq, %5, %6 : vector<16x16xi32>
    %8 = arith.extui %7 : vector<16x16xi1> to vector<16x16xi32>
    %9 = arith.sitofp %8 : vector<16x16xi32> to vector<16x16xf32>
    %10 = arith.mulf %1, %9 : vector<16x16xf32>
    %cst_2 = arith.constant dense<0.000000e+00> : vector<16xf32>
    %11 = vector.multi_reduction <add>, %10, %cst_2 [0] : vector<16x16xf32> to vector<16xf32>
    %12 = vector.shape_cast %11 : vector<16xf32> to vector<1x16xf32>
    %13 = vector.broadcast %4 : vector<16x1xf32> to vector<16x16xf32>
    %14 = vector.broadcast %12 : vector<1x16xf32> to vector<16x16xf32>
    %15 = arith.addf %13, %14 : vector<16x16xf32>
    %cst_3 = arith.constant 2.000000e+00 : f32
    %16 = vector.broadcast %cst_3 : f32 to vector<16x16xf32>
    %17 = arith.mulf %16, %1 : vector<16x16xf32>
    %18 = arith.subf %15, %17 : vector<16x16xf32>
    %cst_4 = arith.constant 0.000000e+00 : f32
    %19 = vector.broadcast %cst_4 : f32 to vector<16x16xf32>
    %20 = arith.maximumf %18, %19 : vector<16x16xf32>
    %21 = math.sqrt %20 : vector<16x16xf32>
    %c0_5 = arith.constant 0 : index
    %c0_6 = arith.constant 0 : index
    %22 = vector.load %arg2[%c0_5, %c0_6] : memref<16x1xi32, #tpu.memory_space<vmem>>, vector<16x1xi32>
    %c0_7 = arith.constant 0 : index
    %c0_8 = arith.constant 0 : index
    %23 = vector.load %arg3[%c0_7, %c0_8] : memref<1x16xi32, #tpu.memory_space<vmem>>, vector<1x16xi32>
    %24 = vector.broadcast %22 : vector<16x1xi32> to vector<16x16xi32>
    %25 = vector.broadcast %23 : vector<1x16xi32> to vector<16x16xi32>
    %26 = arith.cmpi eq, %24, %25 : vector<16x16xi32>
    %27 = arith.extui %26 : vector<16x16xi1> to vector<16x16xi32>
    %28 = arith.sitofp %27 : vector<16x16xi32> to vector<16x16xf32>
    %cst_9 = arith.constant 1.000000e+00 : f32
    %29 = vector.broadcast %cst_9 : f32 to vector<16x16xf32>
    %30 = arith.subf %29, %9 : vector<16x16xf32>
    %31 = arith.mulf %28, %30 : vector<16x16xf32>
    %cst_10 = arith.constant 1.000000e+00 : f32
    %32 = vector.broadcast %cst_10 : f32 to vector<16x16xf32>
    %33 = arith.subf %32, %28 : vector<16x16xf32>
    %34 = arith.mulf %33, %30 : vector<16x16xf32>
    %35 = arith.mulf %21, %31 : vector<16x16xf32>
    %36 = vector.shape_cast %35 : vector<16x16xf32> to vector<1x16x16xf32>
    %cst_11 = arith.constant dense<0.000000e+00> : vector<1xf32>
    %37 = vector.multi_reduction <add>, %36, %cst_11 [1, 2] : vector<1x16x16xf32> to vector<1xf32>
    %38 = vector.shape_cast %37 : vector<1xf32> to vector<1x1x1xf32>
    %39 = vector.extract %38[0, 0, 0] : f32 from vector<1x1x1xf32>
    %40 = vector.broadcast %39 : f32 to vector<1x1xf32>
    %41 = vector.shape_cast %31 : vector<16x16xf32> to vector<1x16x16xf32>
    %cst_12 = arith.constant dense<0.000000e+00> : vector<1xf32>
    %42 = vector.multi_reduction <add>, %41, %cst_12 [1, 2] : vector<1x16x16xf32> to vector<1xf32>
    %43 = vector.shape_cast %42 : vector<1xf32> to vector<1x1x1xf32>
    %44 = vector.extract %43[0, 0, 0] : f32 from vector<1x1x1xf32>
    %45 = vector.broadcast %44 : f32 to vector<1x1xf32>
    %cst_13 = arith.constant 2.000000e+00 : f32
    %46 = vector.broadcast %cst_13 : f32 to vector<16x16xf32>
    %47 = arith.subf %46, %21 : vector<16x16xf32>
    %cst_14 = arith.constant 0.000000e+00 : f32
    %48 = vector.broadcast %cst_14 : f32 to vector<16x16xf32>
    %49 = arith.maximumf %47, %48 : vector<16x16xf32>
    %50 = arith.mulf %49, %34 : vector<16x16xf32>
    %51 = vector.shape_cast %50 : vector<16x16xf32> to vector<1x16x16xf32>
    %cst_15 = arith.constant dense<0.000000e+00> : vector<1xf32>
    %52 = vector.multi_reduction <add>, %51, %cst_15 [1, 2] : vector<1x16x16xf32> to vector<1xf32>
    %53 = vector.shape_cast %52 : vector<1xf32> to vector<1x1x1xf32>
    %54 = vector.extract %53[0, 0, 0] : f32 from vector<1x1x1xf32>
    %55 = vector.broadcast %54 : f32 to vector<1x1xf32>
    %56 = vector.shape_cast %34 : vector<16x16xf32> to vector<1x16x16xf32>
    %cst_16 = arith.constant dense<0.000000e+00> : vector<1xf32>
    %57 = vector.multi_reduction <add>, %56, %cst_16 [1, 2] : vector<1x16x16xf32> to vector<1xf32>
    %58 = vector.shape_cast %57 : vector<1xf32> to vector<1x1x1xf32>
    %59 = vector.extract %58[0, 0, 0] : f32 from vector<1x1x1xf32>
    %60 = vector.broadcast %59 : f32 to vector<1x1xf32>
    %cst_17 = arith.constant 1.000000e+00 : f32
    %61 = vector.broadcast %cst_17 : f32 to vector<1x1xf32>
    %62 = arith.maximumf %45, %61 : vector<1x1xf32>
    %63 = arith.divf %40, %62 : vector<1x1xf32>
    %cst_18 = arith.constant 1.000000e+00 : f32
    %64 = vector.broadcast %cst_18 : f32 to vector<1x1xf32>
    %65 = arith.maximumf %60, %64 : vector<1x1xf32>
    %66 = arith.divf %55, %65 : vector<1x1xf32>
    %cst_19 = arith.constant 0.000000e+00 : f32
    %67 = vector.broadcast %cst_19 : f32 to vector<1x1xf32>
    %68 = arith.cmpf ogt, %45, %67 : vector<1x1xf32>
    %cst_20 = arith.constant 0.000000e+00 : f32
    %69 = vector.broadcast %cst_20 : f32 to vector<1x1xf32>
    %70 = arith.cmpf ogt, %60, %69 : vector<1x1xf32>
    %71 = arith.andi %68, %70 : vector<1x1xi1>
    %72 = arith.addf %63, %66 : vector<1x1xf32>
    %cst_21 = arith.constant 0.000000e+00 : f32
    %73 = vector.broadcast %cst_21 : f32 to vector<1x1xf32>
    %74 = arith.select %71, %72, %73 : vector<1x1xi1>, vector<1x1xf32>
    %c0_22 = arith.constant 0 : index
    %c0_23 = arith.constant 0 : index
    %75 = vector.load %arg4[%c0_22, %c0_23] : memref<16x128xf32, #tpu.memory_space<vmem>>, vector<16x128xf32>
    %c0_24 = arith.constant 0 : index
    %c0_25 = arith.constant 0 : index
    %76 = vector.load %arg5[%c0_24, %c0_25] : memref<16x128xf32, #tpu.memory_space<vmem>>, vector<16x128xf32>
    %77 = arith.subf %75, %76 : vector<16x128xf32>
    %78 = arith.mulf %77, %77 : vector<16x128xf32>
    %79 = vector.shape_cast %78 : vector<16x128xf32> to vector<1x16x128xf32>
    %cst_26 = arith.constant dense<0.000000e+00> : vector<1xf32>
    %80 = vector.multi_reduction <add>, %79, %cst_26 [1, 2] : vector<1x16x128xf32> to vector<1xf32>
    %81 = vector.shape_cast %80 : vector<1xf32> to vector<1x1x1xf32>
    %82 = vector.extract %81[0, 0, 0] : f32 from vector<1x1x1xf32>
    %83 = vector.broadcast %82 : f32 to vector<1x1xf32>
    %cst_27 = arith.constant 4.8828125E-4 : f32
    %84 = vector.broadcast %cst_27 : f32 to vector<1x1xf32>
    %85 = arith.mulf %83, %84 : vector<1x1xf32>
    %cst_28 = arith.constant 1.000000e+00 : f32
    %86 = vector.broadcast %cst_28 : f32 to vector<1x1xf32>
    %87 = arith.mulf %86, %74 : vector<1x1xf32>
    %cst_29 = arith.constant 1.000000e-01 : f32
    %88 = vector.broadcast %cst_29 : f32 to vector<1x1xf32>
    %89 = arith.mulf %88, %85 : vector<1x1xf32>
    %90 = arith.addf %87, %89 : vector<1x1xf32>
    %91 = tpu.iota {dimensions = array<i32: 1>} : vector<1x128xi32>
    %c0_i32 = arith.constant 0 : i32
    %92 = vector.broadcast %c0_i32 : i32 to vector<1x128xi32>
    %93 = arith.cmpi eq, %91, %92 : vector<1x128xi32>
    %94 = arith.extui %93 : vector<1x128xi1> to vector<1x128xi32>
    %95 = arith.sitofp %94 : vector<1x128xi32> to vector<1x128xf32>
    %96 = vector.broadcast %90 : vector<1x1xf32> to vector<1x128xf32>
    %97 = arith.mulf %96, %95 : vector<1x128xf32>
    %c1_i32 = arith.constant 1 : i32
    %98 = vector.broadcast %c1_i32 : i32 to vector<1x128xi32>
    %99 = arith.cmpi eq, %91, %98 : vector<1x128xi32>
    %100 = arith.extui %99 : vector<1x128xi1> to vector<1x128xi32>
    %101 = arith.sitofp %100 : vector<1x128xi32> to vector<1x128xf32>
    %102 = vector.broadcast %74 : vector<1x1xf32> to vector<1x128xf32>
    %103 = arith.mulf %102, %101 : vector<1x128xf32>
    %104 = arith.addf %97, %103 : vector<1x128xf32>
    %c2_i32 = arith.constant 2 : i32
    %105 = vector.broadcast %c2_i32 : i32 to vector<1x128xi32>
    %106 = arith.cmpi eq, %91, %105 : vector<1x128xi32>
    %107 = arith.extui %106 : vector<1x128xi1> to vector<1x128xi32>
    %108 = arith.sitofp %107 : vector<1x128xi32> to vector<1x128xf32>
    %109 = vector.broadcast %85 : vector<1x1xf32> to vector<1x128xf32>
    %110 = arith.mulf %109, %108 : vector<1x128xf32>
    %111 = arith.addf %104, %110 : vector<1x128xf32>
    %c0_30 = arith.constant 0 : index
    %c0_31 = arith.constant 0 : index
    %112 = vector.load %arg6[%c0_30, %c0_31] : memref<1x128xf32, #tpu.memory_space<vmem>>, vector<1x128xf32>
    tpu.vector_store %arg6[%c0_30, %c0_31], %111 {strides = array<i32>} : memref<1x128xf32, #tpu.memory_space<vmem>>, vector<1x128xf32>,
    return
  }
  func.func @transform_0(%arg0: i32) -> (i32, i32) {
    %c0_i32 = arith.constant 0 : i32
    %c0_i32_0 = arith.constant 0 : i32
    %c0_i32_1 = arith.constant 0 : i32
    return %c0_i32, %c0_i32_0 : i32, i32
  }
  func.func @transform_1(%arg0: i32) -> (i32, i32) {
    %c0_i32 = arith.constant 0 : i32
    %c0_i32_0 = arith.constant 0 : i32
    %c0_i32_1 = arith.constant 0 : i32
    return %c0_i32, %c0_i32_0 : i32, i32
  }
  func.func @transform_2(%arg0: i32) -> (i32, i32) {
    %c0_i32 = arith.constant 0 : i32
    %c0_i32_0 = arith.constant 0 : i32
    %c0_i32_1 = arith.constant 0 : i32
    return %c0_i32, %c0_i32_0 : i32, i32
  }
  func.func @transform_3(%arg0: i32) -> (i32, i32) {
    %c0_i32 = arith.constant 0 : i32
    %c0_i32_0 = arith.constant 0 : i32
    %c0_i32_1 = arith.constant 0 : i32
    return %c0_i32, %c0_i32_0 : i32, i32
  }
  func.func @transform_4(%arg0: i32) -> (i32, i32) {
    %c0_i32 = arith.constant 0 : i32
    %c0_i32_0 = arith.constant 0 : i32
    %c0_i32_1 = arith.constant 0 : i32
    return %c0_i32, %c0_i32_0 : i32, i32
  }
  func.func @transform_5(%arg0: i32) -> (i32, i32) {
    %c0_i32 = arith.constant 0 : i32
    %c0_i32_0 = arith.constant 0 : i32
    %c0_i32_1 = arith.constant 0 : i32
    return %c0_i32, %c0_i32_0 : i32, i32
  }
}

</mosaic_0001>

<bundles_post_ra>
// kernel: tpu_custom_call.1
= control target key start
LH: loop header
LB: loop body
LE: loop exit
PB: predicated region body
PF: predicated region fallthrough
CT: control target
= control target key end

     0   :  { %10 = vsyncpa [#allocation3], 0  ;;  %s598_s0 = inlined_call_operand.vmem [shape: f32[16,32], index: 0, kind: input, shape index: {}]   ;;  %s599_s1 = inlined_call_operand.vmem [shape: s32[16,1], index: 1, kind: input, shape index: {}]   ;;  %s600_s2 = inlined_call_operand.hbm [shape: s32[1,16], index: 2, kind: input, shape index: {}]   ;;  %s601_s3 = inlined_call_operand.hbm [shape: f32[16,128], index: 3, kind: input, shape index: {}]   ;;  %s602_s4 = inlined_call_operand.vmem [shape: f32[16,128], index: 4, kind: input, shape index: {}]   ;;  %s603_s5 = inlined_call_operand.hbm [shape: f32[1,128], index: 5, kind: output, shape index: {}]  }
   0x1   :  { %11 = vsyncpa [#allocation6], 0 }
   0x2   :  { %12 = vsyncpa [#allocation4], 0  ;;  %s463_s18 = smov [#allocation2]   ;;  %s464_s20 = smov [#allocation5]  }
   0x3   :  { %s23_s19 = sshll.u32 %s463_s18, 4  ;;  %s32_s21 = sshll.u32 %s464_s20, 4  ;;  %s24_s19 = int_to_ptr.vmem [resolvable:$true] %s23_s19  ;;  %s500_s21 = int_to_ptr.vmem [resolvable:$true] %s32_s21 }
   0x4   :  { %s391_s24 = scalar_lea.hbm %s600_s2, 16 }
   0x5   :  { %p392_p0 = scmp.ne.s32.totalorder %s600_s2, %s391_s24  ;;  %p395_p1 = scmp.lt.u32.totalorder %s391_s24, %s600_s2 }
   0x7   :  { %p397_p2 = pnand %p395_p1, %p392_p0 }
   0x9   :  { %400 = shalt.err (!%p397_p2)
}
   0xa   :  { %s401_s29 = scalar_lea.vmem %s24_s19, 16  ;;  %s405_s30 = scalar_lea.vmem %s24_s19, 32 }
   0xb   :  { %p402_p3 = scmp.ne.s32.totalorder %s24_s19, %s401_s29  ;;  %p406_p4 = scmp.lt.s32.totalorder %s24_s19, %s24_s19 }
   0xc   :  { %p407_p5 = scmp.lt.s32.totalorder %s405_s30, %s401_s29 }
   0xe   :  { %p408_p6 = por %p407_p5, %p406_p4 }
  0x10   :  { %p409_p7 = pnand %p408_p6, %p402_p3 }
  0x12   :  { %412 = shalt.err (!%p409_p7)
}
  0x13   :  { %26 = dma.hbm_to_vmem [thread:$0]  %s600_s2, 16, %s24_s19, [#allocation3]  }
  0x14   :  { %s413_s10 = scalar_lea.hbm %s601_s3, 256 }
  0x15   :  { %p414_p8 = scmp.ne.s32.totalorder %s601_s3, %s413_s10  ;;  %p417_p9 = scmp.lt.u32.totalorder %s413_s10, %s601_s3 }
  0x17   :  { %p419_p10 = pnand %p417_p9, %p414_p8 }
  0x19   :  { %422 = shalt.err (!%p419_p10)
}
  0x1a   :  { %s423_s15 = scalar_lea.vmem %s500_s21, 256  ;;  %p428_p12 = scmp.lt.s32.totalorder %s500_s21, %s500_s21 }
  0x1b   :  { %p424_p11 = scmp.ne.s32.totalorder %s500_s21, %s423_s15  ;;  %p429_p13 = scmp.lt.s32.totalorder %s423_s15, %s423_s15 }
  0x1d   :  { %p430_p0 = por %p429_p13, %p428_p12 }
  0x1f   :  { %p431_p1 = pnand %p430_p0, %p424_p11 }
  0x21   :  { %434 = shalt.err (!%p431_p1)
}
  0x22   :  { %s465_s2 = smov 128   ;;  %s466_s16 = smov 8  }
  0x23   :  { %38 = dma.hbm_to_vmem [thread:$0]  %s601_s3, 256, %s500_s21, [#allocation6], %s465_s2, %s465_s2, %s466_s16  }
  0x24   :  { %457 = dma.done.wait [#allocation3], 16  }
  0x25   :  { %458 = vsyncadd [#allocation3], 4294967280 }
  0x26   :  { %459 = dma.done.wait [#allocation6], 256  }
  0x27   :  { %460 = vsyncadd [#allocation6], 4294967040  ;;  %v467_v0 = vmov 0   ;;  %vm49_vm0 = vcmask 261120   ;;  %v47_v1 = vld [vmem:[%s598_s0] sm:$0xff]  ;;  %v48_v2 = vld [vmem:[%s598_s0 + $0x8] sm:$0xff]  ;;  %v139_v10 = vlaneseq }
  0x28   :  { %381 = vset.pattern.permute.xlu1 %v467_v0  ;;  %382 = vset.pattern.permute.xlu0 %v467_v0  ;;  %vm359_vm1 = vmpackc.low %vm49_vm0, %vm49_vm0  ;;  %v184_v3 = vld [vmem:[%s599_s1] sm:$0xff]  ;;  %v358_v4 = vpack.c.bf16 %v48_v2, %v47_v1  ;;  %v131_v5 = vmul.f32 %v47_v1, %v47_v1  ;;  %v132_v6 = vmul.f32 %v48_v2, %v48_v2  ;;  %v185_v7 = vld [vmem:[%s599_s1 + $0x8] sm:$0xff]  ;;  %v468_v14 = vmov 0.0   ;;  %s469_s7 = smov [#allocation7]  }
  0x29   :  { %355 = vmatprep.mubr.msk.f32.mxu0 %vm49_vm0, %v47_v1  ;;  %188 = vperm.xlu1 %381, %v184_v3   ;;  %v140_v11 = vshrl.u32 %v139_v10, 7  ;;  %v549_v12 = vand.u32 127, %v139_v10  ;;  %v341_v16 = vld [vmem:[#allocation2] ss:$0 sm:$0xff]  ;;  %vm152_vm6 = vcmask 130048   ;;  %s325_s8 = sshll.u32 %s469_s7, 4  ;;  %s326_s8 = int_to_ptr.vmem [resolvable:$true] %s325_s8 }
  0x2a   :  { %360 = vmatprep.subr.msk.bf16.mxu0 %vm359_vm1, %v358_v4  ;;  %v133_v8 = vsel %vm49_vm0, %v131_v5, 0.0  ;;  %v136_v9 = vsel %vm49_vm0, %v132_v6, 0.0  ;;  %s435_s9 = scalar_lea.vmem %s326_s8, 16  ;;  %s439_s10 = scalar_lea.vmem %s326_s8, 32 }
  0x2b   :  { %363 = vmatpush3.bf16.xpose.msk.msra.mxu0 %vm359_vm1, %v358_v4  ;;  %134 = vadd.xlane.f32.xlu0 %v133_v8  ;;  %v141_v13 = vadd.s32 8, %v140_v11  ;;  %vm144_vm2 = vcmp.eq.s32.totalorder %v140_v11, %v549_v12  ;;  %v282_v11 = vld [vmem:[#allocation5] sm:$0xff]  ;;  %vm308_vm12 = vcmp.eq.s32.totalorder %v549_v12, 1  ;;  %vm304_vm13 = vcmp.eq.s32.totalorder %v549_v12, 0  ;;  %p436_p2 = scmp.ne.s32.totalorder %s326_s8, %s435_s9  ;;  %p440_p3 = scmp.lt.s32.totalorder %s326_s8, %s326_s8 }
  0x2c   :  { %v339_v15 = vsel %vm144_vm2, 1.0, %v468_v14  ;;  %p441_p4 = scmp.lt.s32.totalorder %s439_s10, %s435_s9 }
  0x2d   :  { %191 = vperm.xlu1 %381, %v185_v7   ;;  %vm145_vm3 = vcmp.eq.s32.totalorder %v141_v13, %v549_v12  ;;  %v203_v17 = vsub.f32 1.0, %v339_v15 }
  0x2e   :  { %v340_v19 = vsel %vm145_vm3, 1.0, %v468_v14  ;;  %p442_p5 = por %p441_p4, %p440_p3 }
  0x2f   :  { %137 = vadd.xlane.f32.xlu0 %v136_v9  ;;  %v204_v21 = vsub.f32 1.0, %v340_v19 }
  0x30   :  { %p443_p6 = pnand %p442_p5, %p436_p2 }
  0x32   :  { %356 = vmatmul.mubr.msk.f32.vlgmr.msra.gmra.mrb[0].mxu0 %vm49_vm0, %v48_v2  ;;  %vm313_vm0 = vcmp.eq.s32.totalorder %v549_v12, 2 }
  0xa8   :  { %v189_v18 = vpop.permute.xlu1 %188 }
  0xa9   :  { %vm197_vm4 = vcmp.eq.s32.totalorder %v189_v18, %v341_v16  ;;  %v285_v18 = vld [vmem:[%s602_s4 + $0x8] sm:$0xff] }
  0xaa   :  { %v342_v20 = vsel %vm197_vm4, 1.0, %v468_v14 }
  0xab   :  { %v205_v22 = vmul.f32 %v342_v20, %v203_v17  ;;  %v207_v23 = vsub.f32 1.0, %v342_v20 }
  0xac   :  { %v192_v24 = vpop.permute.xlu1 %191 }
  0xad   :  { %v556_v25 = vmul.f32 %v207_v23, %v203_v17  ;;  %vm198_vm5 = vcmp.eq.s32.totalorder %v192_v24, %v341_v16  ;;  %v226_v29 = vsel %vm152_vm6, %v205_v22, 0.0  ;;  %v283_v16 = vld [vmem:[#allocation5 + $0x8] sm:$0xff]  ;;  %v284_v17 = vld [vmem:[%s602_s4] sm:$0xff] }
  0xae   :  { %v343_v26 = vsel %vm198_vm5, 1.0, %v468_v14  ;;  %v286_v23 = vsub.f32 %v282_v11, %v284_v17  ;;  %v287_v24 = vsub.f32 %v283_v16, %v285_v18  ;;  %v345_v18 = vsel %vm308_vm12, 1.0, %v468_v14 }
  0xaf   :  { %v206_v27 = vmul.f32 %v343_v26, %v204_v21  ;;  %v208_v28 = vsub.f32 1.0, %v343_v26  ;;  %v258_v32 = vsel %vm152_vm6, %v556_v25, 0.0 }
  0xb1   :  { %v210_v30 = vmul.f32 %v208_v28, %v204_v21  ;;  %v227_v31 = vsel %vm152_vm6, %v206_v27, 0.0  ;;  %v288_v28 = vmul.f32 %v286_v23, %v286_v23 }
  0xb2   :  { %v228_v33 = vadd.f32 %v227_v31, %v226_v29  ;;  %v289_v29 = vmul.f32 %v287_v24, %v287_v24 }
  0xb3   :  { %v259_v34 = vsel %vm152_vm6, %v210_v30, 0.0 }
  0xb4   :  { %229 = vadd.xlane.f32.xlu1 %v228_v33  ;;  %v564_v35 = vadd.f32 %v259_v34, %v258_v32  ;;  %v290_v31 = vadd.f32 %v289_v29, %v288_v28 }
  0xb8   :  { %v135_v45 = vpop.xlane.xlu0 %134 }
  0xbc   :  { %v138_v49 = vpop.xlane.xlu0 %137 }
 0x105   :  { %v357_v36 = vpop.f32.mrb[0].mxu0 }
 0x106   :  { %v151_v37 = vmul.f32 %v357_v36, %v340_v19  ;;  %v122_v38 = vpop.f32.mrb[1].mxu0  ;;  %v165_v51 = vmul.f32 2.0, %v357_v36 }
 0x107   :  { %v150_v39 = vmul.f32 %v339_v15, %v122_v38  ;;  %v164_v52 = vmul.f32 2.0, %v122_v38 }
 0x108   :  { %v154_v40 = vsel %vm152_vm6, %v151_v37, 0.0 }
 0x109   :  { %v153_v41 = vsel %vm152_vm6, %v150_v39, 0.0 }
 0x10a   :  { %v155_v42 = vadd.f32 %v154_v40, %v153_v41 }
 0x10c   :  { %v156_v43 = vrot.slane %v155_v42, 4 }
 0x10e   :  { %v157_v44 = vadd.f32 %v156_v43, %v155_v42 }
 0x110   :  { %v158_v46 = vrot.slane %v157_v44, 2 }
 0x112   :  { %v159_v47 = vadd.f32 %v158_v46, %v157_v44 }
 0x114   :  { %v160_v48 = vrot.slane %v159_v47, 1 }
 0x116   :  { %v161_v50 = vadd.f32 %v160_v48, %v159_v47 }
 0x118   :  { %v162_v53 = vadd.f32 %v161_v50, %v135_v45  ;;  %v163_v54 = vadd.f32 %v161_v50, %v138_v49 }
 0x11a   :  { %v166_v55 = vsub.f32 %v162_v53, %v164_v52  ;;  %v167_v56 = vsub.f32 %v163_v54, %v165_v51 }
 0x11c   :  { %v168_v57 = vmax.f32 %v166_v55, 0.0  ;;  %v169_v58 = vmax.f32 %v167_v56, 0.0 }
 0x11e   :  { %383 = vrsqrt.f32 %v168_v57  ;;  %vm172_vm7 = vcmp.eq.f32.partialorder %v168_v57, inf  ;;  %v175_v62 = vand.u32 2147483648, %v168_v57  ;;  %vm174_vm8 = vcmp.eq.f32.partialorder %v168_v57, 0.0 }
 0x11f   :  { %385 = vrsqrt.f32 %v169_v58  ;;  %vm179_vm9 = vcmp.eq.f32.partialorder %v169_v58, inf  ;;  %v182_v1 = vand.u32 2147483648, %v169_v58  ;;  %vm181_vm10 = vcmp.eq.f32.partialorder %v169_v58, 0.0 }
 0x128   :  { %v384_v59 = vpop.eup %383 }
 0x129   :  { %v386_v60 = vpop.eup %385  ;;  %v171_v61 = vmul.f32 %v384_v59, %v168_v57 }
 0x12a   :  { %v178_v63 = vmul.f32 %v386_v60, %v169_v58 }
 0x12b   :  { %v173_v0 = vsel %vm172_vm7, %v168_v57, %v171_v61 }
 0x12c   :  { %v176_v2 = vsel %vm174_vm8, %v175_v62, %v173_v0  ;;  %v180_v3 = vsel %vm179_vm9, %v169_v58, %v178_v63 }
 0x12d   :  { %v183_v4 = vsel %vm181_vm10, %v182_v1, %v180_v3  ;;  %v211_v5 = vmul.f32 %v205_v22, %v176_v2  ;;  %v239_v6 = vsub.f32 2.0, %v176_v2 }
 0x12e   :  { %v212_v7 = vmul.f32 %v206_v27, %v183_v4  ;;  %v240_v8 = vsub.f32 2.0, %v183_v4 }
 0x12f   :  { %v213_v9 = vsel %vm152_vm6, %v211_v5, 0.0  ;;  %v241_v10 = vmax.f32 %v239_v6, 0.0 }
 0x130   :  { %v214_v13 = vsel %vm152_vm6, %v212_v7, 0.0  ;;  %v242_v15 = vmax.f32 %v240_v8, 0.0 }
 0x131   :  { %v215_v19 = vadd.f32 %v214_v13, %v213_v9  ;;  %v243_v20 = vmul.f32 %v241_v10, %v556_v25 }
 0x132   :  { %v244_v21 = vmul.f32 %v242_v15, %v210_v30 }
 0x133   :  { %216 = vadd.xlane.f32.xlu0 %v215_v19  ;;  %v245_v22 = vsel %vm152_vm6, %v243_v20, 0.0  ;;  %v344_v19 = vsel %vm304_vm13, 1.0, %v468_v14 }
 0x134   :  { %v246_v26 = vsel %vm152_vm6, %v244_v21, 0.0  ;;  %v346_v21 = vsel %vm313_vm0, 1.0, %v468_v14 }
 0x135   :  { %v247_v27 = vadd.f32 %v246_v26, %v245_v22 }
 0x137   :  { %248 = vadd.xlane.f32.xlu0 %v247_v27 }
 0x13b   :  { %261 = vadd.xlane.f32.xlu0 %v564_v35 }
 0x13f   :  { %291 = vadd.xlane.f32.xlu0 %v290_v31 }
 0x141   :  { %v230_v32 = vpop.xlane.xlu1 %229 }
 0x142   :  { %v231_v33 = vrot.slane %v230_v32, 4 }
 0x144   :  { %v232_v34 = vadd.f32 %v231_v33, %v230_v32 }
 0x146   :  { %v233_v25 = vrot.slane %v232_v34, 2 }
 0x148   :  { %v234_v38 = vadd.f32 %v233_v25, %v232_v34 }
 0x14a   :  { %v235_v45 = vrot.slane %v234_v38, 1 }
 0x14c   :  { %v236_v51 = vadd.f32 %v235_v45, %v234_v38 }
 0x1c0   :  { %v217_v30 = vpop.xlane.xlu0 %216 }
 0x1c1   :  { %v218_v36 = vrot.slane %v217_v30, 4 }
 0x1c3   :  { %v219_v37 = vadd.f32 %v218_v36, %v217_v30 }
 0x1c4   :  { %v249_v39 = vpop.xlane.xlu0 %248 }
 0x1c5   :  { %v220_v40 = vrot.slane %v219_v37, 2  ;;  %v250_v41 = vrot.slane %v249_v39, 4 }
 0x1c7   :  { %v251_v42 = vadd.f32 %v250_v41, %v249_v39  ;;  %v221_v43 = vadd.f32 %v220_v40, %v219_v37 }
 0x1c8   :  { %v262_v44 = vpop.xlane.xlu0 %261 }
 0x1c9   :  { %v252_v46 = vrot.slane %v251_v42, 2  ;;  %v263_v47 = vrot.slane %v262_v44, 4  ;;  %v222_v35 = vrot.slane %v221_v43, 1 }
 0x1cb   :  { %v264_v48 = vadd.f32 %v263_v47, %v262_v44  ;;  %v223_v49 = vadd.f32 %v222_v35, %v221_v43  ;;  %v253_v50 = vadd.f32 %v252_v46, %v251_v42 }
 0x1cc   :  { %v292_v52 = vpop.xlane.xlu0 %291 }
 0x1cd   :  { %v265_v53 = vrot.slane %v264_v48, 2  ;;  %364 = vpush %v223_v49  ;;  %v293_v54 = vrot.slane %v292_v52, 4  ;;  %v254_v55 = vrot.slane %v253_v50, 1 }
 0x1ce   :  { %366 = vpush %v236_v51 }
 0x1cf   :  { %v294_v56 = vadd.f32 %v293_v54, %v292_v52  ;;  %v255_v57 = vadd.f32 %v254_v55, %v253_v50  ;;  %v266_v58 = vadd.f32 %v265_v53, %v264_v48 }
 0x1d1   :  { %v295_v59 = vrot.slane %v294_v56, 2  ;;  %368 = vpush %v255_v57  ;;  %v267_v60 = vrot.slane %v266_v58, 1 }
 0x1d3   :  { %v296_v61 = vadd.f32 %v295_v59, %v294_v56  ;;  %v268_v62 = vadd.f32 %v267_v60, %v266_v58 }
 0x1d5   :  { %370 = vpush %v268_v62  ;;  %v297_v63 = vrot.slane %v296_v61, 1 }
 0x1d7   :  { %v298_v0 = vadd.f32 %v297_v63, %v296_v61 }
 0x1d9   :  { %372 = vpush %v298_v0 }
 0x1fe   :  { %s365_s4 = spop %364 }
 0x1ff   :  { %s367_s28 = spop %366  ;;  %v225_v8 = vstv %s365_s4 }
 0x200   :  { %v238_v1 = vstv %s367_s28 }
 0x201   :  { %v271_v2 = vmax.f32 %v238_v1, 1.0  ;;  %vm277_vm14 = vcmp.gt.f32.partialorder %v238_v1, 0.0 }
 0x202   :  { %s369_s29 = spop %368 }
 0x203   :  { %387 = vrcp.f32 %v271_v2  ;;  %v257_v9 = vstv %s369_s29 }
 0x206   :  { %s371_s30 = spop %370 }
 0x207   :  { %v270_v3 = vstv %s371_s30 }
 0x208   :  { %v274_v4 = vmax.f32 %v270_v3, 1.0  ;;  %vm278_vm11 = vcmp.gt.f32.partialorder %v270_v3, 0.0 }
 0x209   :  { %vm279_vm15 = vmand %vm277_vm14, %vm278_vm11 }
 0x20a   :  { %389 = vrcp.f32 %v274_v4  ;;  %s373_s6 = spop %372 }
 0x20b   :  { %v300_v5 = vstv %s373_s6 }
 0x20c   :  { %v301_v10 = vmul.f32 0.00048828125, %v300_v5 }
 0x20d   :  { %v388_v6 = vpop.eup %387 }
 0x20e   :  { %v273_v11 = vmul.f32 %v388_v6, %v225_v8  ;;  %v302_v16 = vmul.f32 0.1, %v301_v10  ;;  %v316_v24 = vmul.f32 %v346_v21, %v301_v10 }
 0x214   :  { %v390_v7 = vpop.eup %389 }
 0x215   :  { %v276_v13 = vmul.f32 %v390_v7, %v257_v9 }
 0x217   :  { %v280_v15 = vadd.f32 %v276_v13, %v273_v11 }
 0x219   :  { %v281_v17 = vsel %vm279_vm15, %v280_v15, 0.0 }
 0x21a   :  { %v303_v20 = vadd.f32 %v302_v16, %v281_v17  ;;  %v311_v22 = vmul.f32 %v345_v18, %v281_v17 }
 0x21c   :  { %v307_v23 = vmul.f32 %v344_v19, %v303_v20 }
 0x21e   :  { %v312_v26 = vadd.f32 %v311_v22, %v307_v23 }
 0x220   :  { %v317_v27 = vadd.f32 %v316_v24, %v312_v26 }
 0x222   :  { %318 = vst [vmem:[#allocation7] sm:$0x1] %v317_v27 }
 0x223   :  { %446 = shalt.err (!%p443_p6)
}
 0x224   :  { %s447_s13 = scalar_lea.hbm %s603_s5, 16 }
 0x225   :  { %p448_p7 = scmp.ne.s32.totalorder %s603_s5, %s447_s13  ;;  %p451_p8 = scmp.lt.u32.totalorder %s447_s13, %s603_s5 }
 0x227   :  { %p453_p9 = pnand %p451_p8, %p448_p7 }
 0x229   :  { %456 = shalt.err (!%p453_p9)
}
 0x22a   :  { %328 = dma.vmem_to_hbm [thread:$0]  %s326_s8, 16, %s603_s5, [#allocation4]  }
 0x22b   :  { %461 = dma.done.wait [#allocation4], 16  }
 0x22c   :  { %462 = vsyncadd [#allocation4], 4294967280 }
 0x22d   :  { %332 = vsyncpa [#allocation3], 1 }
 0x22e   :  { %333 = vsyncpa [#allocation6], 1 }
 0x22f   :  { %334 = vsyncpa [#allocation4], 1 }

</bundles_post_ra>
